<compile_context>
chip_gen: v7x
topology: tpu7x:2x2x1
jax: 0.10.0
libtpu: 0.0.40
codegen_flags: <defaults>
</compile_context>

<pallas_src>
import jax
import jax.numpy as jnp
from jax import lax
from jax.experimental import pallas as pl
from jax.experimental.pallas import tpu as pltpu


def _round_up(x: int, m: int) -> int:
    return (x + m - 1) // m * m


def _cdiv(a: int, b: int) -> int:
    return (a + b - 1) // b


# --------------------------------------------------------------------------
# Kernels
# --------------------------------------------------------------------------
def _fused_kernel(h_ref, c_ref, wp_ref, bp_ref, out_h_ref, out_c_ref):
    """Small-H path: one packed MXU matmul covering both linears.

    h_ref, c_ref : [bb, 2H]      activations
    wp_ref       : [2Hp, 4H]     block-diagonal packed weights (PyTorch layout)
    bp_ref       : [1, 2Hp]      packed biases (f32)
    out_*_ref    : [bb, Hp]      lane-dense outputs
    """
    hp = out_h_ref.shape[1]
    x = jnp.concatenate([h_ref[...], c_ref[...]], axis=-1)      # [bb, 4H]
    x = x.astype(wp_ref.dtype)
    # Contract last dims directly (== x @ Wp.T), accumulate in f32 on the MXU.
    acc = lax.dot_general(x, wp_ref[...], (((1,), (1,)), ((), ())),
                          preferred_element_type=jnp.float32)   # [bb, 2Hp]
    y = jnp.maximum(acc + bp_ref[...], 0.0)
    out_h_ref[...] = y[:, :hp].astype(out_h_ref.dtype)
    out_c_ref[...] = y[:, hp:].astype(out_c_ref.dtype)


def _split_kernel(h_ref, c_ref, wh_ref, bh_ref, wc_ref, bc_ref,
                  out_h_ref, out_c_ref):
    """Large-H path: two MXU matmuls, weights kept in PyTorch [Hp, 2H] layout."""
    dims = (((1,), (1,)), ((), ()))
    hid = lax.dot_general(h_ref[...].astype(wh_ref.dtype), wh_ref[...], dims,
                          preferred_element_type=jnp.float32)
    out_h_ref[...] = jnp.maximum(hid + bh_ref[...], 0.0).astype(out_h_ref.dtype)
    cel = lax.dot_general(c_ref[...].astype(wc_ref.dtype), wc_ref[...], dims,
                          preferred_element_type=jnp.float32)
    out_c_ref[...] = jnp.maximum(cel + bc_ref[...], 0.0).astype(out_c_ref.dtype)


# --------------------------------------------------------------------------
# One-time parameter prep (run at parameter-load time, NOT per decode step)
# --------------------------------------------------------------------------
def prepare_state_reducer_params(w_hidden, b_hidden, w_cell, b_cell,
                                 weight_dtype=jnp.bfloat16):
    """Zero-pads H -> Hp (multiple of 128) and (for small H) packs both linears
    into one block-diagonal weight. No transposes: PyTorch nn.Linear layout."""
    H, twoH = w_hidden.shape
    assert twoH == 2 * H
    Hp = _round_up(H, 128)
    fused = (Hp == 128)        # H <= 128: both linears fit one 256-wide MXU tile

    params = {
        "H": H, "Hp": Hp, "twoH": twoH, "fused": fused,
        "weight_dtype": jnp.dtype(weight_dtype),
        # Raw copies kept only for the tiny-shape XLA fallback path.
        "wh_raw": w_hidden, "bh_raw": b_hidden,
        "wc_raw": w_cell, "bc_raw": b_cell,
    }

    if fused:
        wp = jnp.zeros((2 * Hp, 2 * twoH), weight_dtype)
        wp = wp.at[:H, :twoH].set(w_hidden.astype(weight_dtype))
        wp = wp.at[Hp:Hp + H, twoH:].set(w_cell.astype(weight_dtype))
        bp = jnp.zeros((1, 2 * Hp), jnp.float32)
        bp = bp.at[0, :H].set(b_hidden.astype(jnp.float32))
        bp = bp.at[0, Hp:Hp + H].set(b_cell.astype(jnp.float32))
        params.update(wp=wp, bp=bp)
    else:
        def pad_w(w):
            return jnp.zeros((Hp, twoH), weight_dtype).at[:H, :].set(
                w.astype(weight_dtype))

        def pad_b(b):
            return jnp.zeros((1, Hp), jnp.float32).at[0, :H].set(
                b.astype(jnp.float32))

        params.update(wh=pad_w(w_hidden), bh=pad_b(b_hidden),
                      wc=pad_w(w_cell), bc=pad_b(b_cell))
    return params


# --------------------------------------------------------------------------
# VMEM budgeting helpers (generation-aware)
# --------------------------------------------------------------------------
def _vmem_capacity_bytes() -> int:
    try:
        info = pltpu.get_tpu_info()
        cap = getattr(info, "vmem_capacity_bytes", None)
        if cap:
            return int(cap)
    except Exception:
        pass
    return 64 * 1024 * 1024   # conservative: v7x per-TensorCore VMEM


def _vmem_footprint_bytes(bb, twoH, Hp, fused, act_bytes, w_bytes, out_bytes):
    inp = 2 * bb * twoH * act_bytes * 2          # two activation tiles, double-buffered
    out = 2 * bb * Hp * out_bytes * 2            # two output tiles, double-buffered
    if fused:
        wgt = 2 * Hp * 2 * twoH * w_bytes + 2 * Hp * 4      # Buffered(1): single copy
        tmp = bb * 2 * twoH * w_bytes + 2 * bb * 2 * Hp * 4  # concat copy + f32 acc/relu
    else:
        wgt = 2 * (Hp * twoH * w_bytes) + 2 * (Hp * 4)
        tmp = 2 * bb * twoH * w_bytes + 2 * bb * Hp * 4
    return inp + out + wgt + tmp


# --------------------------------------------------------------------------
# Hot-path wrapper
# --------------------------------------------------------------------------
def pointer_generator_state_reducer(hidden_state, cell_state, params, *,
                                    block_b: int | None = None,
                                    out_dtype=None,
                                    force_kernel: bool = False):
    """Returns (reduced_hidden_state, reduced_cell_state), each [B, H]."""
    B, twoH = hidden_state.shape
    H, Hp, fused = params["H"], params["Hp"], params["fused"]
    assert twoH == params["twoH"]
    out_dtype = hidden_state.dtype if out_dtype is None else jnp.dtype(out_dtype)

    # Tiny shapes: custom-call + grid overhead dwarfs compute; let XLA fuse it.
    if not force_kernel and B * Hp < 64 * 1024:
        rh = jnp.maximum(hidden_state @ params["wh_raw"].T + params["bh_raw"], 0.0)
        rc = jnp.maximum(cell_state @ params["wc_raw"].T + params["bc_raw"], 0.0)
        return rh.astype(out_dtype), rc.astype(out_dtype)

    act_bytes = hidden_state.dtype.itemsize
    w_bytes = params["weight_dtype"].itemsize
    out_bytes = out_dtype.itemsize

    vmem_cap = _vmem_capacity_bytes()
    budget = int(vmem_cap * 0.7)
    if block_b is None:
        # v6e/v5e (128 MiB physical) take bigger batch tiles than v7x (64 MiB).
        block_b = 1024 if vmem_cap >= 100 * 1024 * 1024 else 512

    if B <= 16:
        bb = B
    else:
        # Guarantee >= 2 grid steps so the "parallel" batch axis can shard
        # across both v7x TensorCores.
        bb = min(block_b, max(8, _round_up(_cdiv(B, 2), 8)))
        while bb > 8 and _vmem_footprint_bytes(
                bb, twoH, Hp, fused, act_bytes, w_bytes, out_bytes) > budget:
            bb = max(8, _round_up(bb // 2, 8))
    grid = (_cdiv(B, bb),)

    footprint = _vmem_footprint_bytes(bb, twoH, Hp, fused,
                                      act_bytes, w_bytes, out_bytes)
    vmem_limit = int(min(budget, max(32 * 1024 * 1024, 2 * footprint)))

    # Advisory cost so XLA can schedule/overlap this small custom call.
    w_elems = (2 * Hp) * (2 * twoH) if fused else 2 * Hp * twoH
    cost = pl.CostEstimate(
        flops=2 * 2 * B * twoH * Hp,            # two linears, K=2H, N=Hp each
        transcendentals=0,
        bytes_accessed=(2 * B * twoH * act_bytes
                        + w_elems * w_bytes
                        + 2 * Hp * 4
                        + 2 * B * Hp * out_bytes),
    )

    act_spec = pl.BlockSpec((bb, twoH), lambda i: (i, 0))
    out_specs = (pl.BlockSpec((bb, Hp), lambda i: (i, 0)),
                 pl.BlockSpec((bb, Hp), lambda i: (i, 0)))
    out_shape = (jax.ShapeDtypeStruct((B, Hp), out_dtype),
                 jax.ShapeDtypeStruct((B, Hp), out_dtype))

    def resident(shape):
        # Constant-index parameter block: single-buffered, VMEM-resident.
        return pl.BlockSpec(shape, lambda i: (0, 0),
                            pipeline_mode=pl.Buffered(1))

    cparams = pltpu.CompilerParams(
        dimension_semantics=("parallel",),       # shard batch across TCs on v7x
        vmem_limit_bytes=vmem_limit)

    if fused:
        out_h, out_c = pl.pallas_call(
            _fused_kernel,
            out_shape=out_shape,
            grid=grid,
            in_specs=[act_spec, act_spec,
                      resident((2 * Hp, 2 * twoH)),
                      resident((1, 2 * Hp))],
            out_specs=out_specs,
            compiler_params=cparams,
            cost_estimate=cost,
        )(hidden_state, cell_state, params["wp"], params["bp"])
    else:
        out_h, out_c = pl.pallas_call(
            _split_kernel,
            out_shape=out_shape,
            grid=grid,
            in_specs=[act_spec, act_spec,
                      resident((Hp, twoH)), resident((1, Hp)),
                      resident((Hp, twoH)), resident((1, Hp))],
            out_specs=out_specs,
            compiler_params=cparams,
            cost_estimate=cost,
        )(hidden_state, cell_state,
          params["wh"], params["bh"], params["wc"], params["bc"])

    if Hp != H:   # strip lane padding (no-op for H % 128 == 0)
        out_h = out_h[:, :H]
        out_c = out_c[:, :H]
    return out_h, out_c


# --------------------------------------------------------------------------
# Self-test
# --------------------------------------------------------------------------
def _make_case(key, B, H):
    twoH = 2 * H
    k = jax.random.split(key, 6)
    w_h = jax.random.normal(k[0], (H, twoH), jnp.float32) * 0.1
    b_h = jax.random.normal(k[1], (H,), jnp.float32) * 0.1
    w_c = jax.random.normal(k[2], (H, twoH), jnp.float32) * 0.1
    b_c = jax.random.normal(k[3], (H,), jnp.float32) * 0.1
    h = jax.random.normal(k[4], (B, twoH), jnp.float32)
    c = jax.random.normal(k[5], (B, twoH), jnp.float32)
    return w_h, b_h, w_c, b_c, h, c


def _reference(h, c, w_h, b_h, w_c, b_c):
    return (jnp.maximum(h @ w_h.T + b_h, 0.0),
            jnp.maximum(c @ w_c.T + b_c, 0.0))


if __name__ == "__main__":
    # --- Case 1: module's nominal shape (B=2, hidden_dim=32), fused small-H
    #             path, f32 weights -> tight numeric check of the kernel.
    B, H = 2, 32
    w_h, b_h, w_c, b_c, h, c = _make_case(jax.random.PRNGKey(0), B, H)
    ref_h, ref_c = _reference(h, c, w_h, b_h, w_c, b_c)

    params_f32 = prepare_state_reducer_params(w_h, b_h, w_c, b_c,
                                              weight_dtype=jnp.float32)
    rh, rc = pointer_generator_state_reducer(h, c, params_f32, force_kernel=True)
    jax.block_until_ready((rh, rc))
    assert rh.shape == (B, H) and rc.shape == (B, H)
    assert jnp.allclose(rh, ref_h, atol=1e-5, rtol=1e-5), "hidden mismatch (f32)"
    assert jnp.allclose(rc, ref_c, atol=1e-5, rtol=1e-5), "cell mismatch (f32)"

    # --- Case 2: same shape, production bf16 weight path (looser tolerance).
    params_bf16 = prepare_state_reducer_params(w_h, b_h, w_c, b_c)  # bf16 default
    rh2, rc2 = pointer_generator_state_reducer(h, c, params_bf16, force_kernel=True)
    jax.block_until_ready((rh2, rc2))
    assert jnp.allclose(rh2, ref_h, atol=3e-2, rtol=3e-2), "hidden mismatch (bf16)"
    assert jnp.allclose(rc2, ref_c, atol=3e-2, rtol=3e-2), "cell mismatch (bf16)"

    # --- Case 3: larger H exercises the split (two-matmul) path.
    B2, H2 = 4, 256
    w_h2, b_h2, w_c2, b_c2, h2, c2 = _make_case(jax.random.PRNGKey(1), B2, H2)
    params_256 = prepare_state_reducer_params(w_h2, b_h2, w_c2, b_c2)
    rh3, rc3 = pointer_generator_state_reducer(h2, c2, params_256, force_kernel=True)
    jax.block_until_ready((rh3, rc3))
    ref_h2, ref_c2 = _reference(h2, c2, w_h2, b_h2, w_c2, b_c2)
    assert rh3.shape == (B2, H2) and rc3.shape == (B2, H2)
    assert jnp.allclose(rh3, ref_h2, atol=5e-2, rtol=5e-2), "hidden mismatch (split)"
    assert jnp.allclose(rc3, ref_c2, atol=5e-2, rtol=5e-2), "cell mismatch (split)"

    # --- Tiny-shape XLA fallback path sanity check.
    rh4, rc4 = pointer_generator_state_reducer(h, c, params_f32)
    assert jnp.allclose(rh4, ref_h, atol=1e-5, rtol=1e-5), "fallback mismatch"

    print("KERNEL_OK")
</pallas_src>

<mosaic_0001>
module attributes {stable_mosaic.version = 11 : i64} {
  func.func @_fused_kernel(%arg0: i32, %arg1: memref<2x64xf32, #tpu.memory_space<vmem>>, %arg2: memref<2x64xf32, #tpu.memory_space<vmem>>, %arg3: memref<256x128xf32, #tpu.memory_space<vmem>>, %arg4: memref<1x256xf32, #tpu.memory_space<vmem>>, %arg5: memref<2x128xf32, #tpu.memory_space<vmem>>, %arg6: memref<2x128xf32, #tpu.memory_space<vmem>>) attributes {dimension_semantics = [#tpu.dimension_semantics<parallel>], iteration_bounds = array<i64: 1>, scalar_prefetch = 0 : i64, scratch_operands = 0 : i64, tpu.core_type = #tpu.core_type<tc>, window_params = [{transform_indices = @transform_0, window_bounds = array<i64: 2, 64>}, {transform_indices = @transform_1, window_bounds = array<i64: 2, 64>}, {pipeline_mode = #tpu.pipeline_mode<synchronous>, transform_indices = @transform_2, window_bounds = array<i64: 256, 128>}, {pipeline_mode = #tpu.pipeline_mode<synchronous>, transform_indices = @transform_3, window_bounds = array<i64: 1, 256>}, {transform_indices = @transform_4, window_bounds = array<i64: 2, 128>}, {transform_indices = @transform_5, window_bounds = array<i64: 2, 128>}]} {
    %c0 = arith.constant 0 : index
    %c0_0 = arith.constant 0 : index
    %0 = vector.load %arg1[%c0, %c0_0] : memref<2x64xf32, #tpu.memory_space<vmem>>, vector<2x64xf32>
    %c0_1 = arith.constant 0 : index
    %c0_2 = arith.constant 0 : index
    %1 = vector.load %arg2[%c0_1, %c0_2] : memref<2x64xf32, #tpu.memory_space<vmem>>, vector<2x64xf32>
    %2 = tpu.concatenate %0, %1 in 1 : vector<2x64xf32>, vector<2x64xf32> -> vector<2x128xf32>
    %c0_3 = arith.constant 0 : index
    %c0_4 = arith.constant 0 : index
    %3 = vector.load %arg3[%c0_3, %c0_4] : memref<256x128xf32, #tpu.memory_space<vmem>>, vector<256x128xf32>
    %cst = arith.constant dense<0.000000e+00> : vector<2x256xf32>
    %4 = tpu.matmul %2, %3, %cst {dimension_numbers = #tpu.dot_dimension_numbers<[1], [1], [0], [0], [0, 0, 1, 0], [], []>} : vector<2x128xf32>, vector<256x128xf32>, vector<2x256xf32> -> vector<2x256xf32>
    %c0_5 = arith.constant 0 : index
    %c0_6 = arith.constant 0 : index
    %5 = vector.load %arg4[%c0_5, %c0_6] : memref<1x256xf32, #tpu.memory_space<vmem>>, vector<1x256xf32>
    %6 = vector.broadcast %5 : vector<1x256xf32> to vector<2x256xf32>
    %7 = arith.addf %4, %6 : vector<2x256xf32>
    %cst_7 = arith.constant 0.000000e+00 : f32
    %8 = vector.broadcast %cst_7 : f32 to vector<2x256xf32>
    %9 = arith.maximumf %7, %8 : vector<2x256xf32>
    %10 = vector.extract_strided_slice %9 {offsets = [0, 0], sizes = [2, 128], strides = [1, 1]} : vector<2x256xf32> to vector<2x128xf32>
    %c0_8 = arith.constant 0 : index
    %c0_9 = arith.constant 0 : index
    %11 = vector.load %arg5[%c0_8, %c0_9] : memref<2x128xf32, #tpu.memory_space<vmem>>, vector<2x128xf32>
    tpu.vector_store %arg5[%c0_8, %c0_9], %10 {strides = array<i32>} : memref<2x128xf32, #tpu.memory_space<vmem>>, vector<2x128xf32>,
    %12 = vector.extract_strided_slice %9 {offsets = [0, 128], sizes = [2, 128], strides = [1, 1]} : vector<2x256xf32> to vector<2x128xf32>
    %c0_10 = arith.constant 0 : index
    %c0_11 = arith.constant 0 : index
    %13 = vector.load %arg6[%c0_10, %c0_11] : memref<2x128xf32, #tpu.memory_space<vmem>>, vector<2x128xf32>
    tpu.vector_store %arg6[%c0_10, %c0_11], %12 {strides = array<i32>} : memref<2x128xf32, #tpu.memory_space<vmem>>, vector<2x128xf32>,
    return
  }
  func.func @transform_0(%arg0: i32) -> (i32, i32) {
    %c0_i32 = arith.constant 0 : i32
    %c0_i32_0 = arith.constant 0 : i32
    return %arg0, %c0_i32 : i32, i32
  }
  func.func @transform_1(%arg0: i32) -> (i32, i32) {
    %c0_i32 = arith.constant 0 : i32
    %c0_i32_0 = arith.constant 0 : i32
    return %arg0, %c0_i32 : i32, i32
  }
  func.func @transform_2(%arg0: i32) -> (i32, i32) {
    %c0_i32 = arith.constant 0 : i32
    %c0_i32_0 = arith.constant 0 : i32
    %c0_i32_1 = arith.constant 0 : i32
    return %c0_i32, %c0_i32_0 : i32, i32
  }
  func.func @transform_3(%arg0: i32) -> (i32, i32) {
    %c0_i32 = arith.constant 0 : i32
    %c0_i32_0 = arith.constant 0 : i32
    %c0_i32_1 = arith.constant 0 : i32
    return %c0_i32, %c0_i32_0 : i32, i32
  }
  func.func @transform_4(%arg0: i32) -> (i32, i32) {
    %c0_i32 = arith.constant 0 : i32
    %c0_i32_0 = arith.constant 0 : i32
    return %arg0, %c0_i32 : i32, i32
  }
  func.func @transform_5(%arg0: i32) -> (i32, i32) {
    %c0_i32 = arith.constant 0 : i32
    %c0_i32_0 = arith.constant 0 : i32
    return %arg0, %c0_i32 : i32, i32
  }
}

</mosaic_0001>

<bundles_post_ra>
// kernel: tpu_custom_call.1
= control target key start
LH: loop header
LB: loop body
LE: loop exit
PB: predicated region body
PF: predicated region fallthrough
CT: control target
= control target key end

     0   :  { %11 = vsyncpa [#allocation3], 0  ;;  %s471_s0 = inlined_call_operand.hbm [shape: f32[2,64], index: 0, kind: input, shape index: {}]   ;;  %s472_s1 = inlined_call_operand.vmem [shape: f32[2,64], index: 1, kind: input, shape index: {}]   ;;  %s473_s2 = inlined_call_operand.hbm [shape: f32[256,128], index: 2, kind: input, shape index: {}]   ;;  %s474_s3 = inlined_call_operand.vmem [shape: f32[1,256], index: 3, kind: input, shape index: {}]   ;;  %s475_s4 = inlined_call_operand.hbm [shape: f32[2,128], index: 4, kind: output, shape index: {0}]   ;;  %s476_s5 = inlined_call_operand.hbm [shape: f32[2,128], index: 5, kind: output, shape index: {1}]  }
   0x1   :  { %12 = vsyncpa [#allocation6], 0 }
   0x2   :  { %13 = vsyncpa [#allocation4], 0 }
   0x3   :  { %14 = vsyncpa [#allocation9], 0  ;;  %s373_s18 = smov [#allocation2]   ;;  %s374_s20 = smov [#allocation5]  }
   0x4   :  { %s21_s19 = sshll.u32 %s373_s18, 4  ;;  %s32_s21 = sshll.u32 %s374_s20, 4  ;;  %s22_s19 = int_to_ptr.vmem [resolvable:$true] %s21_s19  ;;  %s410_s21 = int_to_ptr.vmem [resolvable:$true] %s32_s21 }
   0x5   :  { %s277_s24 = scalar_lea.hbm %s471_s0, 32 }
   0x6   :  { %p278_p0 = scmp.ne.s32.totalorder %s471_s0, %s277_s24  ;;  %p281_p1 = scmp.lt.u32.totalorder %s277_s24, %s471_s0 }
   0x8   :  { %p283_p2 = pnand %p281_p1, %p278_p0 }
   0xa   :  { %286 = shalt.err (!%p283_p2)
}
   0xb   :  { %s287_s29 = scalar_lea.vmem %s22_s19, 32  ;;  %p292_p4 = scmp.lt.s32.totalorder %s22_s19, %s22_s19 }
   0xc   :  { %p288_p3 = scmp.ne.s32.totalorder %s22_s19, %s287_s29  ;;  %p293_p5 = scmp.lt.s32.totalorder %s287_s29, %s287_s29 }
   0xe   :  { %p294_p6 = por %p293_p5, %p292_p4 }
  0x10   :  { %p295_p7 = pnand %p294_p6, %p288_p3 }
  0x12   :  { %298 = shalt.err (!%p295_p7)
}
  0x13   :  { %24 = dma.hbm_to_vmem [thread:$0]  %s471_s0, 32, %s22_s19, [#allocation3]  }
  0x14   :  { %s299_s9 = scalar_lea.hbm %s473_s2, 4096 }
  0x15   :  { %p300_p8 = scmp.ne.s32.totalorder %s473_s2, %s299_s9  ;;  %p303_p9 = scmp.lt.u32.totalorder %s299_s9, %s473_s2 }
  0x17   :  { %p305_p10 = pnand %p303_p9, %p300_p8 }
  0x19   :  { %308 = shalt.err (!%p305_p10)
}
  0x1a   :  { %s309_s14 = scalar_lea.vmem %s410_s21, 4096  ;;  %p314_p12 = scmp.lt.s32.totalorder %s410_s21, %s410_s21 }
  0x1b   :  { %p310_p11 = scmp.ne.s32.totalorder %s410_s21, %s309_s14  ;;  %p315_p13 = scmp.lt.s32.totalorder %s309_s14, %s309_s14 }
  0x1d   :  { %p316_p0 = por %p315_p13, %p314_p12 }
  0x1f   :  { %p317_p1 = pnand %p316_p0, %p310_p11 }
  0x21   :  { %320 = shalt.err (!%p317_p1)
}
  0x22   :  { %s375_s0 = smov 128   ;;  %s376_s15 = smov 8  }
  0x23   :  { %38 = dma.hbm_to_vmem [thread:$0]  %s473_s2, 4096, %s410_s21, [#allocation6], %s375_s0, %s375_s0, %s376_s15  }
  0x24   :  { %365 = dma.done.wait [#allocation3], 32  }
  0x25   :  { %366 = vsyncadd [#allocation3], 4294967264 }
  0x26   :  { %367 = dma.done.wait [#allocation6], 4096  }
  0x27   :  { %368 = vsyncadd [#allocation6], 4294963200  ;;  %v48_v0 = vld [vmem:[%s472_s1] sm:$0x3]  ;;  %v71_v1 = vld [vmem:[#allocation5 + $0x80] sm:$0xff]  ;;  %s377_s20 = smov 64   ;;  %v89_v52 = vlaneseq }
  0x28   :  { %v72_v2 = vld [vmem:[#allocation5 + $0x88] sm:$0xff]  ;;  %50 = vrot.lane.b32.xlu0 %v48_v0, %s377_s20  ;;  %v55_v4 = vld [vmem:[#allocation5] sm:$0xff]  ;;  %v73_v6 = vld [vmem:[#allocation5 + $0x90] sm:$0xff]  ;;  %vm53_vm0 = vcmask 523264   ;;  %s378_s21 = smov [#allocation7]   ;;  %s379_s23 = smov [#allocation8]  }
  0x29   :  { %v238_v3 = vpack.c.bf16 %v72_v2, %v71_v1  ;;  %v56_v5 = vld [vmem:[#allocation5 + $0x8] sm:$0xff]  ;;  %v74_v8 = vld [vmem:[#allocation5 + $0x98] sm:$0xff]  ;;  %v57_v10 = vld [vmem:[#allocation5 + $0x10] sm:$0xff]  ;;  %v90_v53 = vshrl.u32 %v89_v52, 7  ;;  %s180_s22 = sshll.u32 %s378_s21, 4  ;;  %s190_s24 = sshll.u32 %s379_s23, 4  ;;  %s181_s22 = int_to_ptr.vmem [resolvable:$true] %s180_s22  ;;  %s191_s24 = int_to_ptr.vmem [resolvable:$true] %s190_s24 }
  0x2a   :  { %v240_v7 = vpack.c.bf16 %v56_v5, %v55_v4  ;;  %v242_v9 = vpack.c.bf16 %v74_v8, %v73_v6  ;;  %v58_v11 = vld [vmem:[#allocation5 + $0x18] sm:$0xff]  ;;  %v75_v12 = vld [vmem:[#allocation5 + $0xa0] sm:$0xff]  ;;  %v76_v13 = vld [vmem:[#allocation5 + $0xa8] sm:$0xff]  ;;  %s321_s25 = scalar_lea.vmem %s181_s22, 32  ;;  %p326_p3 = scmp.lt.s32.totalorder %s181_s22, %s181_s22 }
  0x2b   :  { %239 = vmatprep.subr.bf16.mxu0 %v238_v3  ;;  %v244_v14 = vpack.c.bf16 %v58_v11, %v57_v10  ;;  %v246_v15 = vpack.c.bf16 %v76_v13, %v75_v12  ;;  %v59_v16 = vld [vmem:[#allocation5 + $0x20] sm:$0xff]  ;;  %v60_v17 = vld [vmem:[#allocation5 + $0x28] sm:$0xff]  ;;  %v77_v18 = vld [vmem:[#allocation5 + $0xb0] sm:$0xff]  ;;  %v91_v54 = vsub.s32 0, %v90_v53  ;;  %v95_v56 = vsub.s32 1, %v90_v53  ;;  %p322_p2 = scmp.ne.s32.totalorder %s181_s22, %s321_s25  ;;  %p327_p4 = scmp.lt.s32.totalorder %s321_s25, %s321_s25 }
  0x2c   :  { %241 = vmatpush3.bf16.xpose.msra.mxu0 %v240_v7  ;;  %v78_v19 = vld [vmem:[#allocation5 + $0xb8] sm:$0xff]  ;;  %v248_v20 = vpack.c.bf16 %v60_v17, %v59_v16  ;;  %v61_v22 = vld [vmem:[#allocation5 + $0x30] sm:$0xff]  ;;  %v79_v24 = vld [vmem:[#allocation5 + $0xc0] sm:$0xff] }
  0x2d   :  { %243 = vmatprep.subr.bf16.mxu0 %v242_v9  ;;  %v250_v21 = vpack.c.bf16 %v78_v19, %v77_v18  ;;  %v62_v23 = vld [vmem:[#allocation5 + $0x38] sm:$0xff]  ;;  %v80_v25 = vld [vmem:[#allocation5 + $0xc8] sm:$0xff]  ;;  %v63_v28 = vld [vmem:[#allocation5 + $0x40] sm:$0xff]  ;;  %p328_p5 = por %p327_p4, %p326_p3 }
  0x2e   :  { %v252_v26 = vpack.c.bf16 %v62_v23, %v61_v22  ;;  %v254_v27 = vpack.c.bf16 %v80_v25, %v79_v24  ;;  %v64_v29 = vld [vmem:[#allocation5 + $0x48] sm:$0xff]  ;;  %v81_v30 = vld [vmem:[#allocation5 + $0xd0] sm:$0xff]  ;;  %v82_v31 = vld [vmem:[#allocation5 + $0xd8] sm:$0xff] }
  0x2f   :  { %v256_v32 = vpack.c.bf16 %v64_v29, %v63_v28  ;;  %v258_v33 = vpack.c.bf16 %v82_v31, %v81_v30  ;;  %v65_v34 = vld [vmem:[#allocation5 + $0x50] sm:$0xff]  ;;  %v66_v35 = vld [vmem:[#allocation5 + $0x58] sm:$0xff]  ;;  %v83_v36 = vld [vmem:[#allocation5 + $0xe0] sm:$0xff]  ;;  %p329_p6 = pnand %p328_p5, %p322_p2 }
  0x30   :  { %v84_v37 = vld [vmem:[#allocation5 + $0xe8] sm:$0xff]  ;;  %v260_v38 = vpack.c.bf16 %v66_v35, %v65_v34  ;;  %v67_v40 = vld [vmem:[#allocation5 + $0x60] sm:$0xff]  ;;  %v85_v42 = vld [vmem:[#allocation5 + $0xf0] sm:$0xff] }
  0x31   :  { %v262_v39 = vpack.c.bf16 %v84_v37, %v83_v36  ;;  %v68_v41 = vld [vmem:[#allocation5 + $0x68] sm:$0xff]  ;;  %v86_v43 = vld [vmem:[#allocation5 + $0xf8] sm:$0xff]  ;;  %v69_v46 = vld [vmem:[#allocation5 + $0x70] sm:$0xff] }
  0x32   :  { %v264_v44 = vpack.c.bf16 %v68_v41, %v67_v40  ;;  %v266_v45 = vpack.c.bf16 %v86_v43, %v85_v42  ;;  %v70_v47 = vld [vmem:[#allocation5 + $0x78] sm:$0xff] }
  0x33   :  { %v268_v48 = vpack.c.bf16 %v70_v47, %v69_v46  ;;  %v47_v49 = vld [vmem:[#allocation2] sm:$0x3] }
  0x34   :  { %245 = vmatpush3.bf16.xpose.msra.mxu0 %v244_v14  ;;  %v87_v55 = vld [vmem:[%s474_s3] sm:$0x3] }
  0x35   :  { %247 = vmatprep.subr.bf16.mxu0 %v246_v15  ;;  %v92_v57 = vrot.slane %v87_v55, %v91_v54  ;;  %v96_v58 = vrot.slane %v87_v55, %v95_v56 }
  0x3c   :  { %249 = vmatpush3.bf16.xpose.msra.mxu0 %v248_v20 }
  0x3d   :  { %251 = vmatprep.subr.bf16.mxu0 %v250_v21 }
  0x44   :  { %253 = vmatpush3.bf16.xpose.msra.mxu0 %v252_v26 }
  0x45   :  { %255 = vmatprep.subr.bf16.mxu0 %v254_v27 }
  0x4c   :  { %257 = vmatpush3.bf16.xpose.msra.mxu0 %v256_v32 }
  0x4d   :  { %259 = vmatprep.subr.bf16.mxu0 %v258_v33 }
  0x54   :  { %261 = vmatpush3.bf16.xpose.msra.mxu0 %v260_v38 }
  0x55   :  { %263 = vmatprep.subr.bf16.mxu0 %v262_v39 }
  0x5c   :  { %265 = vmatpush3.bf16.xpose.msra.mxu0 %v264_v44 }
  0x5d   :  { %267 = vmatprep.subr.bf16.mxu0 %v266_v45 }
  0x64   :  { %269 = vmatpush3.bf16.xpose.msra.mxu0 %v268_v48 }
  0x9a   :  { %v51_v50 = vpop.permute.xlu0 %50 }
  0x9b   :  { %v54_v51 = vsel %vm53_vm0, %v47_v49, %v51_v50 }
  0x9c   :  { %236 = vmatprep.mubr.f32.mxu0 %v54_v51 }
  0x9d   :  { %237 = vmatmul.mubr.f32.vlgmr.msra.gmra.mrb[0].mxu0 %v54_v51 }
 0x170   :  { %v165_v59 = vpop.f32.mrb[0].mxu0 }
 0x171   :  { %v166_v60 = vadd.f32 %v165_v59, %v92_v57  ;;  %v167_v61 = vpop.f32.mrb[1].mxu0 }
 0x172   :  { %v168_v62 = vadd.f32 %v167_v61, %v96_v58 }
 0x173   :  { %v170_v63 = vmax.f32 %v166_v60, 0.0 }
 0x174   :  { %v171_v0 = vmax.f32 %v168_v62, 0.0 }
 0x175   :  { %172 = vst [vmem:[#allocation7] sm:$0x3] %v170_v63 }
 0x176   :  { %173 = vst [vmem:[#allocation8] sm:$0x3] %v171_v0 }
 0x177   :  { %332 = shalt.err (!%p329_p6)
}
 0x178   :  { %s333_s27 = scalar_lea.hbm %s475_s4, 32 }
 0x179   :  { %p334_p7 = scmp.ne.s32.totalorder %s475_s4, %s333_s27  ;;  %p337_p8 = scmp.lt.u32.totalorder %s333_s27, %s475_s4 }
 0x17b   :  { %p339_p9 = pnand %p337_p8, %p334_p7 }
 0x17d   :  { %342 = shalt.err (!%p339_p9)
}
 0x17e   :  { %183 = dma.vmem_to_hbm [thread:$0]  %s181_s22, 32, %s475_s4, [#allocation4]  }
 0x17f   :  { %s343_s9 = scalar_lea.vmem %s191_s24, 32  ;;  %p348_p11 = scmp.lt.s32.totalorder %s191_s24, %s191_s24 }
 0x180   :  { %p344_p10 = scmp.ne.s32.totalorder %s191_s24, %s343_s9  ;;  %p349_p12 = scmp.lt.s32.totalorder %s343_s9, %s343_s9 }
 0x182   :  { %p350_p13 = por %p349_p12, %p348_p11 }
 0x184   :  { %p351_p0 = pnand %p350_p13, %p344_p10 }
 0x186   :  { %354 = shalt.err (!%p351_p0)
}
 0x187   :  { %s355_s12 = scalar_lea.hbm %s476_s5, 32 }
 0x188   :  { %p356_p1 = scmp.ne.s32.totalorder %s476_s5, %s355_s12  ;;  %p359_p2 = scmp.lt.u32.totalorder %s355_s12, %s476_s5 }
 0x18a   :  { %p361_p3 = pnand %p359_p2, %p356_p1 }
 0x18c   :  { %364 = shalt.err (!%p361_p3)
}
 0x18d   :  { %193 = dma.vmem_to_hbm [thread:$0]  %s191_s24, 32, %s476_s5, [#allocation9]  }
 0x18e   :  { %369 = dma.done.wait [#allocation4], 32  }
 0x18f   :  { %370 = vsyncadd [#allocation4], 4294967264 }
 0x190   :  { %371 = dma.done.wait [#allocation9], 32  }
 0x191   :  { %372 = vsyncadd [#allocation9], 4294967264 }
 0x192   :  { %200 = vsyncpa [#allocation3], 1 }
 0x193   :  { %201 = vsyncpa [#allocation6], 1 }
 0x194   :  { %202 = vsyncpa [#allocation4], 1 }
 0x195   :  { %203 = vsyncpa [#allocation9], 1 }

</bundles_post_ra>
